<compile_context>
chip_gen: v5e
topology: v5e:2x2
jax: 0.10.0
libtpu: 0.0.40
codegen_flags: <defaults>
</compile_context>

<pallas_src>
import jax
import jax.numpy as jnp
from jax.experimental import pallas as pl
from jax.experimental.pallas import tpu as pltpu


def _round_up(v, m):
    return -(-v // m) * m


def _crf_energy_kernel_masked(x_ref, w_ref, b_ref, mask_ref, out_ref):
    """energy tile = (x @ W_fused + b_fused) * mask, accumulated in f32.

    x_ref:    [TN, D]     token features (native dtype, e.g. bf16 or f32)
    w_ref:    [D, L*L]    fused weight (resident across the grid)
    b_ref:    [1, L*L]    fused bias (f32, resident)
    mask_ref: [TN, 1]     token mask (f32)
    out_ref:  [TN, L*L]   energy, (prev_label, curr_label) flattened on lanes
    """
    y = jnp.dot(x_ref[...], w_ref[...], preferred_element_type=jnp.float32)
    y = (y + b_ref[...]) * mask_ref[...]
    out_ref[...] = y.astype(out_ref.dtype)


def _crf_energy_kernel_nomask(x_ref, w_ref, b_ref, out_ref):
    """energy tile = x @ W_fused + b_fused (no mask stream, no multiply)."""
    y = jnp.dot(x_ref[...], w_ref[...], preferred_element_type=jnp.float32)
    out_ref[...] = (y + b_ref[...]).astype(out_ref.dtype)


def chain_crf_forward(x, ws, bs, wt, bt, mask=None, *,
                      out_dtype=jnp.float32,
                      max_tile_n=4096,
                      vmem_stream_budget=16 * 1024 * 1024):
    """ChainCRF.forward (bigram=True).

    x:    [B, T, D]  (f32 or bf16; streamed in its native dtype)
    ws:   [L, D]     state_nn.weight  (PyTorch [out_features, in_features])
    bs:   [L]        state_nn.bias
    wt:   [L*L, D]   trans_nn.weight
    bt:   [L*L]      trans_nn.bias
    mask: [B, T] or None
    returns: energy [B, T, L, L] in out_dtype (f32 by default).
    """
    B, T, D = x.shape
    L = ws.shape[0]           # == num_labels + 1
    LL = L * L
    N = B * T

    in_dtype = x.dtype
    x2 = x.reshape(N, D)

    # Fuse the state linear into the transition linear (exact algebra, done
    # in f32, then cast once to the streamed dtype):
    #   energy[n, i, j] = x[n]@(wt[i*L+j] + ws[j]) + (bt[i*L+j] + bs[j])
    w_fused = (wt.astype(jnp.float32).reshape(L, L, D)
               + ws.astype(jnp.float32)[None, :, :]).reshape(LL, D)
    w_fused = jnp.transpose(w_fused).astype(in_dtype)                 # [D, LL]
    b_fused = (bt.astype(jnp.float32).reshape(L, L)
               + bs.astype(jnp.float32)[None, :]).reshape(1, LL)      # f32

    # ---- D-aware token-tile sizing (HBM-bound kernel: big tiles amortize
    # the ~0.35 us/step grid overhead; cap so the grid has >=2 steps so the
    # v7x megacore can shard the "parallel" axis). ----------------------------
    x_bytes = jnp.dtype(in_dtype).itemsize
    o_bytes = jnp.dtype(out_dtype).itemsize
    LL_pad = _round_up(LL, 128)                      # VMEM lane padding
    # double-buffered x tile + out tile (conservatively 4B/elem in VMEM) + mask
    per_token = 2 * (D * x_bytes + LL_pad * 4 + 4)
    tn_target = (vmem_stream_budget // per_token) // 8 * 8
    tn_target = max(512, min(int(max_tile_n), int(tn_target)))

    if N <= 8:
        tn = N                                        # single (full-dim) block
    else:
        half = max(8, _round_up(-(-N // 2), 8))       # >=2 grid steps if possible
        tn = max(8, min(tn_target, half, _round_up(N, 8)))
    assert tn == N or tn % 8 == 0, tn                 # (8,128) sublane rule

    grid = (pl.cdiv(N, tn),)

    # VMEM limit sized from the actual tile (weight + bias double-buffered,
    # streamed tiles double-buffered, + slack); clamped to <=32 MiB which is
    # safe on v5e/v6e/v7x scoped budgets.
    needed = (2 * (D * LL_pad * 4 + LL_pad * 4)       # weight + bias buffers
              + tn * per_token                        # x/out/mask tiles
              + (4 << 20))                            # slack
    vmem_limit = int(min(max(needed, 16 << 20), 32 << 20))

    in_specs = [
        pl.BlockSpec((tn, D), lambda i: (i, 0)),      # x tile (pipelined)
        pl.BlockSpec((D, LL), lambda i: (0, 0)),      # fused weight, resident
        pl.BlockSpec((1, LL), lambda i: (0, 0)),      # fused bias, resident
    ]
    args = [x2, w_fused, b_fused]
    if mask is not None:
        in_specs.append(pl.BlockSpec((tn, 1), lambda i: (i, 0)))
        args.append(mask.reshape(N, 1).astype(jnp.float32))
        kernel = _crf_energy_kernel_masked
    else:
        kernel = _crf_energy_kernel_nomask            # specialized: no mask I/O

    bytes_accessed = (N * D * x_bytes                 # x read
                      + D * LL * x_bytes              # fused weight read
                      + LL * 4                        # fused bias read
                      + N * LL * o_bytes              # energy write
                      + (N * 4 if mask is not None else 0))
    cost = pl.CostEstimate(flops=2 * N * D * LL,
                           transcendentals=0,
                           bytes_accessed=int(bytes_accessed))

    out = pl.pallas_call(
        kernel,
        out_shape=jax.ShapeDtypeStruct((N, LL), out_dtype),
        grid=grid,
        in_specs=in_specs,
        out_specs=pl.BlockSpec((tn, LL), lambda i: (i, 0)),
        compiler_params=pltpu.CompilerParams(
            dimension_semantics=("parallel",),        # megacore sharding on v7x
            vmem_limit_bytes=vmem_limit,
        ),
        cost_estimate=cost,
    )(*args)

    # Lane-dense [N, L*L] -> [B, T, L, L]: pure reshape, no transpose pass.
    return out.reshape(B, T, L, L)


def _reference_forward(x, ws, bs, wt, bt, mask):
    """Pure-JAX (f32) mirror of the PyTorch forward for correctness checking."""
    B, T, _ = x.shape
    L = ws.shape[0]
    xf = x.astype(jnp.float32)
    out_s = jnp.einsum("btd,ld->btl", xf, ws) + bs                     # [B,T,L]
    out_t = (jnp.einsum("btd,kd->btk", xf, wt) + bt).reshape(B, T, L, L)
    out = out_t + out_s[:, :, None, :]
    if mask is not None:
        out = out * mask[:, :, None, None]
    return out


if __name__ == "__main__":
    # Small shapes consistent with the module's forward:
    #   input [batch, length, input_size] = [2, 8, 32], num_labels = 4 -> L = 5
    batch, length, input_size, num_labels = 2, 8, 32, 4
    L = num_labels + 1

    key = jax.random.PRNGKey(0)
    kx, km, kws, kwt = jax.random.split(key, 4)

    x = jax.random.normal(kx, (batch, length, input_size), jnp.float32)
    mask = (jax.random.uniform(km, (batch, length)) > 0.3).astype(jnp.float32)

    # Deterministic parameter init (mirrors reset_parameters: xavier-uniform
    # weights, zero biases; state_nn weight also xavier for determinism).
    def xavier_uniform(k, shape):
        fan_out, fan_in = shape
        a = (6.0 / (fan_in + fan_out)) ** 0.5
        return jax.random.uniform(k, shape, jnp.float32, -a, a)

    ws = xavier_uniform(kws, (L, input_size))            # state_nn.weight
    bs = jnp.zeros((L,), jnp.float32)                    # state_nn.bias
    wt = xavier_uniform(kwt, (L * L, input_size))        # trans_nn.weight
    bt = jnp.zeros((L * L,), jnp.float32)                # trans_nn.bias

    # --- f32 path, with mask (exact vs reference) ---
    energy = jax.block_until_ready(chain_crf_forward(x, ws, bs, wt, bt, mask))
    ref = _reference_forward(x, ws, bs, wt, bt, mask)
    assert energy.shape == (batch, length, L, L), energy.shape
    assert jnp.allclose(energy, ref, atol=1e-5, rtol=1e-5), \
        float(jnp.max(jnp.abs(energy - ref)))

    # --- f32 path, no mask (specialized kernel, no mask stream) ---
    energy_nm = jax.block_until_ready(chain_crf_forward(x, ws, bs, wt, bt))
    ref_nm = _reference_forward(x, ws, bs, wt, bt, None)
    assert jnp.allclose(energy_nm, ref_nm, atol=1e-5, rtol=1e-5)

    # --- remainder-tile path: N = 3*7 = 21 not a multiple of the 16-row tile ---
    xr = jax.random.normal(jax.random.PRNGKey(1), (3, 7, input_size), jnp.float32)
    mr = (jax.random.uniform(jax.random.PRNGKey(2), (3, 7)) > 0.3).astype(jnp.float32)
    energy_r = jax.block_until_ready(chain_crf_forward(xr, ws, bs, wt, bt, mr))
    ref_r = _reference_forward(xr, ws, bs, wt, bt, mr)
    assert jnp.allclose(energy_r, ref_r, atol=1e-5, rtol=1e-5), \
        float(jnp.max(jnp.abs(energy_r - ref_r)))

    # --- bf16 streaming path (halved HBM read traffic; looser tolerance) ---
    x_bf = x.astype(jnp.bfloat16)
    energy_bf = jax.block_until_ready(chain_crf_forward(x_bf, ws, bs, wt, bt, mask))
    ref_bf = _reference_forward(x_bf, ws, bs, wt, bt, mask)
    assert jnp.allclose(energy_bf, ref_bf, atol=5e-2, rtol=5e-2), \
        float(jnp.max(jnp.abs(energy_bf - ref_bf)))

    # TODO(synk): loss()/decode() (forward-backward & Viterbi sequential
    # recurrences over time) are not part of forward() and are not implemented.
    print("KERNEL_OK")
</pallas_src>

<mosaic_0001>
module attributes {stable_mosaic.version = 11 : i64} {
  func.func @_crf_energy_kernel_masked(%arg0: i32, %arg1: memref<8x32xf32, #tpu.memory_space<vmem>>, %arg2: memref<32x25xf32, #tpu.memory_space<vmem>>, %arg3: memref<1x25xf32, #tpu.memory_space<vmem>>, %arg4: memref<8x1xf32, #tpu.memory_space<vmem>>, %arg5: memref<8x25xf32, #tpu.memory_space<vmem>>) attributes {dimension_semantics = [#tpu.dimension_semantics<parallel>], iteration_bounds = array<i64: 2>, scalar_prefetch = 0 : i64, scratch_operands = 0 : i64, tpu.core_type = #tpu.core_type<tc>, window_params = [{transform_indices = @transform_0, window_bounds = array<i64: 8, 32>}, {pipeline_mode = #tpu.pipeline_mode<synchronous>, transform_indices = @transform_1, window_bounds = array<i64: 32, 25>}, {pipeline_mode = #tpu.pipeline_mode<synchronous>, transform_indices = @transform_2, window_bounds = array<i64: 1, 25>}, {transform_indices = @transform_3, window_bounds = array<i64: 8, 1>}, {transform_indices = @transform_4, window_bounds = array<i64: 8, 25>}]} {
    %c0 = arith.constant 0 : index
    %c0_0 = arith.constant 0 : index
    %0 = vector.load %arg1[%c0, %c0_0] : memref<8x32xf32, #tpu.memory_space<vmem>>, vector<8x32xf32>
    %c0_1 = arith.constant 0 : index
    %c0_2 = arith.constant 0 : index
    %1 = vector.load %arg2[%c0_1, %c0_2] : memref<32x25xf32, #tpu.memory_space<vmem>>, vector<32x25xf32>
    %cst = arith.constant dense<0.000000e+00> : vector<8x25xf32>
    %2 = tpu.matmul %0, %1, %cst {dimension_numbers = #tpu.dot_dimension_numbers<[1], [0], [0], [1], [0, 0, 1, 1], [], []>} : vector<8x32xf32>, vector<32x25xf32>, vector<8x25xf32> -> vector<8x25xf32>
    %c0_3 = arith.constant 0 : index
    %c0_4 = arith.constant 0 : index
    %3 = vector.load %arg3[%c0_3, %c0_4] : memref<1x25xf32, #tpu.memory_space<vmem>>, vector<1x25xf32>
    %4 = vector.broadcast %3 : vector<1x25xf32> to vector<8x25xf32>
    %5 = arith.addf %2, %4 : vector<8x25xf32>
    %c0_5 = arith.constant 0 : index
    %c0_6 = arith.constant 0 : index
    %6 = vector.load %arg4[%c0_5, %c0_6] : memref<8x1xf32, #tpu.memory_space<vmem>>, vector<8x1xf32>
    %7 = vector.broadcast %6 : vector<8x1xf32> to vector<8x25xf32>
    %8 = arith.mulf %5, %7 : vector<8x25xf32>
    %c0_7 = arith.constant 0 : index
    %c0_8 = arith.constant 0 : index
    %9 = vector.load %arg5[%c0_7, %c0_8] : memref<8x25xf32, #tpu.memory_space<vmem>>, vector<8x25xf32>
    tpu.vector_store %arg5[%c0_7, %c0_8], %8 {strides = array<i32>} : memref<8x25xf32, #tpu.memory_space<vmem>>, vector<8x25xf32>,
    return
  }
  func.func @transform_0(%arg0: i32) -> (i32, i32) {
    %c0_i32 = arith.constant 0 : i32
    %c0_i32_0 = arith.constant 0 : i32
    return %arg0, %c0_i32 : i32, i32
  }
  func.func @transform_1(%arg0: i32) -> (i32, i32) {
    %c0_i32 = arith.constant 0 : i32
    %c0_i32_0 = arith.constant 0 : i32
    %c0_i32_1 = arith.constant 0 : i32
    return %c0_i32, %c0_i32_0 : i32, i32
  }
  func.func @transform_2(%arg0: i32) -> (i32, i32) {
    %c0_i32 = arith.constant 0 : i32
    %c0_i32_0 = arith.constant 0 : i32
    %c0_i32_1 = arith.constant 0 : i32
    return %c0_i32, %c0_i32_0 : i32, i32
  }
  func.func @transform_3(%arg0: i32) -> (i32, i32) {
    %c0_i32 = arith.constant 0 : i32
    %c0_i32_0 = arith.constant 0 : i32
    return %arg0, %c0_i32 : i32, i32
  }
  func.func @transform_4(%arg0: i32) -> (i32, i32) {
    %c0_i32 = arith.constant 0 : i32
    %c0_i32_0 = arith.constant 0 : i32
    return %arg0, %c0_i32 : i32, i32
  }
}

</mosaic_0001>

<bundles_post_ra>
// kernel: tpu_custom_call.1
= control target key start
LH: loop header
LB: loop body
LE: loop exit
PB: predicated region body
PF: predicated region fallthrough
CT: control target
= control target key end

     0   :  { %9 = vsyncpa [#allocation3], 0  ;;  %s665_s0 = inlined_call_operand.vmem [shape: f32[16,32], index: 0, kind: input, shape index: {}]   ;;  %s666_s1 = inlined_call_operand.hbm [shape: f32[32,25], index: 1, kind: input, shape index: {}]   ;;  %s667_s2 = inlined_call_operand.vmem [shape: f32[1,25], index: 2, kind: input, shape index: {}]   ;;  %s668_s3 = inlined_call_operand.vmem [shape: f32[16,1], index: 3, kind: input, shape index: {}]   ;;  %s669_s4 = inlined_call_operand.hbm [shape: f32[16,25], index: 4, kind: output, shape index: {}]  }
   0x1   :  { %10 = vsyncpa [#allocation4], 0 }
   0x2   :  { %12 = vsyncpa [#allocation4 + $0x1], 0  ;;  %s564_s15 = smov 0   ;;  %s566_s16 = smov 0  }
   0x3   :  { %s568_s17 = smov 0   ;;  %s570_s18 = smov 0  }
   0x4 LB: > { %s585_s19 = sadd.s32 4294967295, %s533_s18   ;;  %s368_s20 = sadd.s32 4294967294, %s533_s18   ;;  %s533_s18 = sphi %s570_s18, %s675_s18   ;;  %s529_s17 = sphi %s568_s17, %s674_s17   ;;  %s525_s16 = sphi %s566_s16, %s673_s16   ;;  %s521_s15 = sphi %s564_s15, %s672_s15  }
   0x5   : > { %s589_s21 = sadd.s32 1, %s533_s18   ;;  %s119_s22 = sadd.s32 1, %s529_s17 }
   0x6   : > { %s116_s23 = ssub.s32 %s533_s18, %s589_s21  ;;  %p129_p0 = scmp.ne.s32.totalorder %s529_s17, %s525_s16 }
   0x7   : > { %p117_p1 = scmp.eq.s32.totalorder %s116_s23, 0  ;;  %p130_p2 = scmp.eq.s32.totalorder %s585_s19, 1 }
   0x8   : > { %p135_p3 = scmp.ne.s32.totalorder %s525_s16, %s521_s15  ;;  %p136_p4 = scmp.eq.s32.totalorder %s368_s20, 1 }
   0x9   : > { %s600_s24 = scalar_select %p117_p1, %s529_s17, %s119_s22  }
   0xa   : > { %p602_p5 = por %p130_p2, %p129_p0  ;;  %p606_p6 = por %p136_p4, %p135_p3 }
   0xb   : > { %p369_p7 = scmp.ge.s32.totalorder %s533_s18, 1  ;;  %p143_p8 = scmp.lt.s32.totalorder %s533_s18, 3 }
   0xc   : > { %p396_p9 = scmp.eq.s32.totalorder %s585_s19, 0  ;;  %s154_s29 = sshll.u32 %s666_s1, 4  ;;  %s155_s29 = int_to_ptr.hbm [resolvable:$true] %s154_s29 }
   0xd   : > { %p144_p10 = pnand %p369_p7, %p143_p8  ;;  %s535_s30 = smov [#allocation2]  }
   0xe   : > { %s156_s5 = sshll.u32 %s535_s30, 4  ;;  %s536_s6 = smov 128   ;;  %s157_s5 = int_to_ptr.vmem [resolvable:$true] %s156_s5 }
   0xf   : > { %p388_p11 = pneg %p144_p10  ;;  %s537_s7 = smov 8  }
  0x10   : > { %189 = sbr.rel (%p144_p10) target bundleno = 163 (0xa3), region = 36 }
  0x11   : > { %p389_p12 = pnand %p396_p9, %p388_p11 }
  0x13   : > { %391 = dma.hbm_to_vmem [thread:$0]  (!%p389_p12), %s155_s29, 512, %s157_s5, [#allocation3], %s536_s6, %s536_s6, %s537_s7  }
  0x15   : > { %512 = dma.done.wait (%p396_p9), [#allocation3], 512  }
  0x16   : > { %514 = vsyncadd (%p396_p9), [#allocation3], 4294966784  ;;  %p219_p13 = scmp.lt.s32.totalorder %s585_s19, 1  ;;  %v538_v0 = vmov 0   ;;  %v231_v1 = vld [vmem:[#allocation2 + $0x18] sm:$0xff]  ;;  %v230_v2 = vld [vmem:[#allocation2 + $0x10] sm:$0xff] }
  0x17   : > { %435 = vset.pattern.permute.xlu0 %v538_v0  ;;  %252 = vmatpush.msra.mxu0 %v231_v1  ;;  %v229_v4 = vld [vmem:[#allocation2 + $0x8] sm:$0xff]  ;;  %v228_v5 = vld [vmem:[#allocation2] sm:$0xff]  ;;  %vm236_vm0 = vcmask 261120   ;;  %s216_s22 = sand.u32 1, %s525_s16   ;;  %s379_s27 = sshll.u32 %s585_s19, 3  ;;  %vm267_vm1 = vcmask 203776  }
  0x18   : > { %s220_s8 = scalar_select %p219_p13, %s585_s19, 1  ;;  %v436_v7 = vld [vmem:[%s667_s2] ss:$0 sm:$0xff] }
  0x19   : > { %253 = vmatpush.msra.mxu0 %v230_v2  ;;  %s374_s23 = sshll.u32 %s216_s22, 3  ;;  %s280_s6 = scalar_lea.hbm %s669_s4, %s379_s27 }
  0x1a   : > { %s375_s9 = sshll.u32 %s220_s8, 3  ;;  %s218_s7 = scalar_lea.vmem [#allocation5], %s374_s23 }
  0x1b   : > { %s226_s12 = scalar_lea.vmem %s668_s3, %s375_s9  ;;  %s222_s20 = scalar_lea.vmem %s665_s0, %s375_s9  ;;  %254 = vmatpush.msra.mxu0 %v229_v4 }
  0x1c   : > { %v260_v3 = vld [vmem:[%s226_s12] sm:$0xff]  ;;  %s282_s8 = sshll.u32 %s218_s7, 4  ;;  %s284_s9 = sshll.u32 %s280_s6, 4  ;;  %s283_s8 = int_to_ptr.vmem [resolvable:$true] %s282_s8  ;;  %s285_s9 = int_to_ptr.hbm [resolvable:$true] %s284_s9 }
  0x1d   : > { %263 = vperm.xlu0 %435, %v260_v3   ;;  %v227_v6 = vld [vmem:[%s222_s20] sm:$0xff]  ;;  %255 = vmatpush.msra.mxu0 %v228_v5  ;;  %s270_s19 = scalar_lea.sflag [#allocation4], %s216_s22  ;;  %s481_s10 = sshra.s32 %s285_s9, 4  ;;  %s482_s10 = int_to_ptr.hbm [resolvable:$true] %s481_s10 }
  0x1e   : > { %377 = vmatmul.msk.f32.vlgmr.msra.gmra.mxu0 %vm236_vm0, %v227_v6  ;;  %s483_s11 = scalar_lea.hbm %s482_s10, 8  ;;  %s487_s14 = scalar_lea.hbm %s669_s4, 16 }
  0x1f   : > { %p484_p0 = scmp.ne.s32.totalorder %s482_s10, %s483_s11  ;;  %p488_p3 = scmp.lt.s32.totalorder %s482_s10, %s669_s4 }
  0x20   : > { %p489_p4 = scmp.lt.s32.totalorder %s487_s14, %s483_s11 }
  0x21   : > { %p485_p1 = pnand %p484_p0, %p602_p5 }
  0x22   : > { %p490_p7 = por %p489_p4, %p488_p3 }
  0x23   : > { %p486_p2 = pneg %p485_p1 }
  0x25   : > { %p491_p8 = pnand %p490_p7, %p486_p2 }
  0x8f   : > { %v264_v9 = vpop.permute.xlu0 %263 }
  0x9b   : > { %v257_v8 = vpop.f32.mrf.mxu0 }
  0x9c   : > { %v258_v10 = vadd.f32 %v436_v7, %v257_v8 }
  0x9e   : > { %v266_v11 = vmul.f32 %v264_v9, %v258_v10 }
  0xa0   : > { %268 = vst.msk [vmem:[%s218_s7] sm:$0xff] %vm267_vm1, %v266_v11 }
  0xa1   : > { %494 = shalt.err (!%p491_p8)
}
  0xa2   : > { %386 = dma.vmem_to_hbm [thread:$0]  (%p602_p5), %s283_s8, 128, %s285_s9, %s270_s19  }
  0xa3 PF: > { %p398_p9 = scmp.ge.s32.totalorder %s533_s18, 2  ;;  %s296_s22 = sand.u32 1, %s521_s15  }
  0xa4   : > { %s297_s27 = scalar_lea.sflag [#allocation4], %s296_s22 }
  0xa5   : > { %p393_p10 = pnand %p398_p9, %p606_p6 }
  0xa7   : > { %p394_p11 = pneg %p393_p10 }
  0xa9   : > { %516 = dma.done.wait (%p394_p11), %s297_s27, 128  }
  0xaa   : > { %518 = vsyncadd (%p394_p11), %s297_s27, 4294967168  ;;  %p15_p12 = scmp.ge.s32.totalorder %s589_s21, 4   ;;  %s672_s15 = smov %s525_s16 }
  0xab   : > { %s673_s16 = smov %s529_s17  ;;  %s674_s17 = smov %s600_s24 }
  0xac   : > { %s675_s18 = smov %s589_s21  ;;  %17 = sbr.rel (!%p15_p12) target bundleno = 4 (0x4), region = 79 }
  0xb1   :  { %303 = vsyncpa [#allocation3], 1 }
  0xb2   :  { %305 = vsyncpa [#allocation3 + $0x1], 1 }
  0xb3   :  { %306 = vsyncpa [#allocation4], 1 }
  0xb4   :  { %308 = vsyncpa [#allocation4 + $0x1], 1 }

</bundles_post_ra>
